<compile_context>
chip_gen: v5e
topology: v5e:2x2
jax: 0.10.0
libtpu: 0.0.40
codegen_flags: <defaults>
</compile_context>

<pallas_src>
import jax
import jax.numpy as jnp
from jax.experimental import pallas as pl
from jax.experimental.pallas import tpu as pltpu


def _round_up(x, m):
    return ((x + m - 1) // m) * m


# ---------------------------------------------------------------------------
# Kernels
# ---------------------------------------------------------------------------
def _ffn_kernel_fused(x_ref, w_in_ref, b_in_ref, w_out_ref, b_out_ref, o_ref):
    # x_ref:     (tm, H)        row tile (H = true hidden size, contraction dim)
    # w_in_ref:  (H, F_pad)     full W_in^T      (lane-dense F_pad)
    # b_in_ref:  (1, F_pad)     b_in (f32)
    # w_out_ref: (F_pad, H_pad) full W_out^T     (lane-dense H_pad)
    # b_out_ref: (1, H_pad)     b_out (f32)
    # o_ref:     (tm, H_pad)    output tile (lane-dense stores)
    x = x_ref[...]
    h = jnp.dot(x, w_in_ref[...], preferred_element_type=jnp.float32)
    h = jnp.maximum(h + b_in_ref[...], 0.0)                         # bias + ReLU (f32)
    y = jnp.dot(h.astype(w_out_ref.dtype), w_out_ref[...],
                preferred_element_type=jnp.float32)
    o_ref[...] = (y + b_out_ref[...]).astype(o_ref.dtype)


def _ffn_kernel_split(x_ref, w_in_ref, b_in_ref, w_out_ref, b_out_ref, o_ref,
                      acc_ref):
    # Same as fused, but the FF dim is chunked into tiles of size tf and
    # accumulated in an f32 VMEM scratch across grid axis 1.
    f = pl.program_id(1)

    @pl.when(f == 0)
    def _():
        acc_ref[...] = jnp.zeros_like(acc_ref)

    x = x_ref[...]
    h = jnp.dot(x, w_in_ref[...], preferred_element_type=jnp.float32)
    h = jnp.maximum(h + b_in_ref[...], 0.0)
    acc_ref[...] += jnp.dot(h.astype(w_out_ref.dtype), w_out_ref[...],
                            preferred_element_type=jnp.float32)

    @pl.when(f == pl.num_programs(1) - 1)
    def _():
        o_ref[...] = (acc_ref[...] + b_out_ref[...]).astype(o_ref.dtype)


# ---------------------------------------------------------------------------
# Wrapper
# ---------------------------------------------------------------------------
def position_wise_feed_forward(h_V, w_in, b_in, w_out, b_out, *,
                               tm=512, tf=1024, compute_dtype=None):
    """h_V: (..., H).  PyTorch layouts: w_in (F, H), b_in (F,), w_out (H, F), b_out (H,).

    compute_dtype: optional dtype for x / weights inside the kernel
    (e.g. jnp.bfloat16 on v6e/v7x).  Accumulation is always f32.
    """
    H = h_V.shape[-1]
    F = w_in.shape[0]
    lead = h_V.shape[:-1]

    x = h_V.reshape(-1, H)
    M = x.shape[0]

    # ---- tile sizes ------------------------------------------------------
    tm = max(8, min(_round_up(tm, 8), _round_up(M, 8)))    # mult of 8, clamp tiny M
    H_pad = _round_up(H, 128)                              # lane-dense N-dim / stores
    F_pad128 = _round_up(F, 128)
    tf = max(128, _round_up(min(tf, F_pad128), 128))       # FF chunk, mult of 128
    fused = F_pad128 <= tf                                  # whole FF dim in one tile
    F_pad = F_pad128 if fused else _round_up(F, tf)         # FF axis divides into tf
    if fused:
        tf = F_pad

    grid_m = pl.cdiv(M, tm)

    # ---- parameter repacking (one-time, tiny vs. activations) -------------
    w_dtype = compute_dtype if compute_dtype is not None else w_in.dtype
    x_in = x.astype(compute_dtype) if compute_dtype is not None else x

    w_in_t = jnp.zeros((H, F_pad), w_dtype).at[:, :F].set(w_in.T.astype(w_dtype))
    w_out_t = jnp.zeros((F_pad, H_pad), w_dtype).at[:F, :H].set(w_out.T.astype(w_dtype))
    b_in_2d = jnp.zeros((1, F_pad), jnp.float32).at[:, :F].set(b_in.astype(jnp.float32))
    b_out_2d = jnp.zeros((1, H_pad), jnp.float32).at[:, :H].set(b_out.astype(jnp.float32))

    # ---- VMEM budget (double-buffered ins/outs + intermediates) -----------
    xsz = jnp.dtype(x_in.dtype).itemsize
    wsz = jnp.dtype(w_dtype).itemsize
    osz = jnp.dtype(h_V.dtype).itemsize
    live = (2 * (tm * H * xsz            # x tile
                 + H * tf * wsz          # W_in^T tile
                 + tf * H_pad * wsz      # W_out^T tile
                 + tf * 4 + H_pad * 4    # bias tiles
                 + tm * H_pad * osz)     # out tile
            + tm * tf * 4                # ReLU intermediate
            + tm * H_pad * 4)            # f32 result / accumulator
    vmem_limit = max(32 << 20, min(int(1.5 * live) + (4 << 20), 64 << 20))

    cost = pl.CostEstimate(
        flops=4 * M * H * F,
        transcendentals=0,
        bytes_accessed=(M * H * xsz + M * H_pad * osz
                        + 2 * H * F * wsz + (H + F) * 4),
    )

    if fused:
        grid = (grid_m,)
        in_specs = [
            pl.BlockSpec((tm, H), lambda i: (i, 0)),          # x rows
            pl.BlockSpec((H, F_pad), lambda i: (0, 0)),       # W_in^T (resident)
            pl.BlockSpec((1, F_pad), lambda i: (0, 0)),       # b_in
            pl.BlockSpec((F_pad, H_pad), lambda i: (0, 0)),   # W_out^T (resident)
            pl.BlockSpec((1, H_pad), lambda i: (0, 0)),       # b_out
        ]
        out_specs = pl.BlockSpec((tm, H_pad), lambda i: (i, 0))
        scratch_shapes = []
        kernel = _ffn_kernel_fused
        dim_sem = ("parallel",)
    else:
        grid = (grid_m, F_pad // tf)
        in_specs = [
            pl.BlockSpec((tm, H), lambda i, f: (i, 0)),        # x rows
            pl.BlockSpec((H, tf), lambda i, f: (0, f)),        # W_in^T chunk
            pl.BlockSpec((1, tf), lambda i, f: (0, f)),        # b_in chunk
            pl.BlockSpec((tf, H_pad), lambda i, f: (f, 0)),    # W_out^T chunk
            pl.BlockSpec((1, H_pad), lambda i, f: (0, 0)),     # b_out
        ]
        out_specs = pl.BlockSpec((tm, H_pad), lambda i, f: (i, 0))
        scratch_shapes = [pltpu.VMEM((tm, H_pad), jnp.float32)]
        kernel = _ffn_kernel_split
        dim_sem = ("parallel", "arbitrary")

    out = pl.pallas_call(
        kernel,
        out_shape=jax.ShapeDtypeStruct((M, H_pad), h_V.dtype),
        grid_spec=pltpu.PrefetchScalarGridSpec(
            num_scalar_prefetch=0,
            grid=grid,
            in_specs=in_specs,
            out_specs=out_specs,
            scratch_shapes=scratch_shapes,
        ),
        compiler_params=pltpu.CompilerParams(
            dimension_semantics=dim_sem,
            vmem_limit_bytes=vmem_limit,
        ),
        cost_estimate=cost,
    )(x_in, w_in_t, b_in_2d, w_out_t, b_out_2d)

    if H_pad != H:
        out = out[:, :H]
    return out.reshape(*lead, H)


# ---------------------------------------------------------------------------
# Reference / test harness
# ---------------------------------------------------------------------------
def _init_linear_params(key, in_features, out_features, dtype=jnp.float32):
    """Deterministic init matching nn.Linear default: U(-1/sqrt(fan_in), +...)."""
    k_w, k_b = jax.random.split(key)
    bound = 1.0 / (in_features ** 0.5)
    w = jax.random.uniform(k_w, (out_features, in_features), dtype,
                           minval=-bound, maxval=bound)
    b = jax.random.uniform(k_b, (out_features,), dtype,
                           minval=-bound, maxval=bound)
    return w, b


def _reference(h_V, w_in, b_in, w_out, b_out):
    return jnp.maximum(h_V @ w_in.T + b_in, 0.0) @ w_out.T + b_out


if __name__ == "__main__":
    key = jax.random.PRNGKey(0)

    # --- small config matching Local_Module.dense: num_ff = 4 * num_hidden ---
    # (fused path: F_pad = 128 fits one tile, 1-D grid, no accumulator)
    num_hidden, num_ff = 32, 128
    batch, seq = 2, 8
    k_x, k_in, k_out, key = jax.random.split(key, 4)
    h_V = jax.random.normal(k_x, (batch, seq, num_hidden), dtype=jnp.float32)
    w_in, b_in = _init_linear_params(k_in, num_hidden, num_ff)      # (F,H), (F,)
    w_out, b_out = _init_linear_params(k_out, num_ff, num_hidden)   # (H,F), (H,)

    out = jax.block_until_ready(
        position_wise_feed_forward(h_V, w_in, b_in, w_out, b_out))
    ref = _reference(h_V, w_in, b_in, w_out, b_out)
    assert out.shape == (batch, seq, num_hidden)
    assert jnp.allclose(out, ref, atol=2e-4, rtol=2e-4), \
        float(jnp.abs(out - ref).max())

    # --- config exercising multi-block rows (ragged last block) + FF split ---
    # (tm=256 -> grid_m=2 ragged; tf=256 < F=512 -> split path w/ accumulator)
    num_hidden2, num_ff2 = 128, 512
    rows = 384
    k_x2, k_in2, k_out2, key = jax.random.split(key, 4)
    h_V2 = jax.random.normal(k_x2, (rows, num_hidden2), dtype=jnp.float32)
    w_in2, b_in2 = _init_linear_params(k_in2, num_hidden2, num_ff2)
    w_out2, b_out2 = _init_linear_params(k_out2, num_ff2, num_hidden2)

    out2 = jax.block_until_ready(
        position_wise_feed_forward(h_V2, w_in2, b_in2, w_out2, b_out2,
                                   tm=256, tf=256))
    ref2 = _reference(h_V2, w_in2, b_in2, w_out2, b_out2)
    assert out2.shape == (rows, num_hidden2)
    assert jnp.allclose(out2, ref2, atol=5e-4, rtol=5e-4), \
        float(jnp.abs(out2 - ref2).max())

    # --- same shapes, default tiles -> fused path on realistic FF size -------
    out3 = jax.block_until_ready(
        position_wise_feed_forward(h_V2, w_in2, b_in2, w_out2, b_out2))
    assert jnp.allclose(out3, ref2, atol=5e-4, rtol=5e-4), \
        float(jnp.abs(out3 - ref2).max())

    print("KERNEL_OK")
</pallas_src>

<mosaic_0001>
module attributes {stable_mosaic.version = 11 : i64} {
  func.func @_ffn_kernel_fused(%arg0: i32, %arg1: memref<16x32xf32, #tpu.memory_space<vmem>>, %arg2: memref<32x128xf32, #tpu.memory_space<vmem>>, %arg3: memref<1x128xf32, #tpu.memory_space<vmem>>, %arg4: memref<128x128xf32, #tpu.memory_space<vmem>>, %arg5: memref<1x128xf32, #tpu.memory_space<vmem>>, %arg6: memref<16x128xf32, #tpu.memory_space<vmem>>) attributes {dimension_semantics = [#tpu.dimension_semantics<parallel>], iteration_bounds = array<i64: 1>, scalar_prefetch = 0 : i64, scratch_operands = 0 : i64, tpu.core_type = #tpu.core_type<tc>, window_params = [{transform_indices = @transform_0, window_bounds = array<i64: 16, 32>}, {pipeline_mode = #tpu.pipeline_mode<synchronous>, transform_indices = @transform_1, window_bounds = array<i64: 32, 128>}, {pipeline_mode = #tpu.pipeline_mode<synchronous>, transform_indices = @transform_2, window_bounds = array<i64: 1, 128>}, {pipeline_mode = #tpu.pipeline_mode<synchronous>, transform_indices = @transform_3, window_bounds = array<i64: 128, 128>}, {pipeline_mode = #tpu.pipeline_mode<synchronous>, transform_indices = @transform_4, window_bounds = array<i64: 1, 128>}, {transform_indices = @transform_5, window_bounds = array<i64: 16, 128>}]} {
    %c0 = arith.constant 0 : index
    %c0_0 = arith.constant 0 : index
    %0 = vector.load %arg1[%c0, %c0_0] : memref<16x32xf32, #tpu.memory_space<vmem>>, vector<16x32xf32>
    %c0_1 = arith.constant 0 : index
    %c0_2 = arith.constant 0 : index
    %1 = vector.load %arg2[%c0_1, %c0_2] : memref<32x128xf32, #tpu.memory_space<vmem>>, vector<32x128xf32>
    %cst = arith.constant dense<0.000000e+00> : vector<16x128xf32>
    %2 = tpu.matmul %0, %1, %cst {dimension_numbers = #tpu.dot_dimension_numbers<[1], [0], [0], [1], [0, 0, 1, 1], [], []>} : vector<16x32xf32>, vector<32x128xf32>, vector<16x128xf32> -> vector<16x128xf32>
    %c0_3 = arith.constant 0 : index
    %c0_4 = arith.constant 0 : index
    %3 = vector.load %arg3[%c0_3, %c0_4] : memref<1x128xf32, #tpu.memory_space<vmem>>, vector<1x128xf32>
    %4 = vector.broadcast %3 : vector<1x128xf32> to vector<16x128xf32>
    %5 = arith.addf %2, %4 : vector<16x128xf32>
    %cst_5 = arith.constant 0.000000e+00 : f32
    %6 = vector.broadcast %cst_5 : f32 to vector<16x128xf32>
    %7 = arith.maximumf %5, %6 : vector<16x128xf32>
    %c0_6 = arith.constant 0 : index
    %c0_7 = arith.constant 0 : index
    %8 = vector.load %arg4[%c0_6, %c0_7] : memref<128x128xf32, #tpu.memory_space<vmem>>, vector<128x128xf32>
    %cst_8 = arith.constant dense<0.000000e+00> : vector<16x128xf32>
    %9 = tpu.matmul %7, %8, %cst_8 {dimension_numbers = #tpu.dot_dimension_numbers<[1], [0], [0], [1], [0, 0, 1, 1], [], []>} : vector<16x128xf32>, vector<128x128xf32>, vector<16x128xf32> -> vector<16x128xf32>
    %c0_9 = arith.constant 0 : index
    %c0_10 = arith.constant 0 : index
    %10 = vector.load %arg5[%c0_9, %c0_10] : memref<1x128xf32, #tpu.memory_space<vmem>>, vector<1x128xf32>
    %11 = vector.broadcast %10 : vector<1x128xf32> to vector<16x128xf32>
    %12 = arith.addf %9, %11 : vector<16x128xf32>
    %c0_11 = arith.constant 0 : index
    %c0_12 = arith.constant 0 : index
    %13 = vector.load %arg6[%c0_11, %c0_12] : memref<16x128xf32, #tpu.memory_space<vmem>>, vector<16x128xf32>
    tpu.vector_store %arg6[%c0_11, %c0_12], %12 {strides = array<i32>} : memref<16x128xf32, #tpu.memory_space<vmem>>, vector<16x128xf32>,
    return
  }
  func.func @transform_0(%arg0: i32) -> (i32, i32) {
    %c0_i32 = arith.constant 0 : i32
    %c0_i32_0 = arith.constant 0 : i32
    return %arg0, %c0_i32 : i32, i32
  }
  func.func @transform_1(%arg0: i32) -> (i32, i32) {
    %c0_i32 = arith.constant 0 : i32
    %c0_i32_0 = arith.constant 0 : i32
    %c0_i32_1 = arith.constant 0 : i32
    return %c0_i32, %c0_i32_0 : i32, i32
  }
  func.func @transform_2(%arg0: i32) -> (i32, i32) {
    %c0_i32 = arith.constant 0 : i32
    %c0_i32_0 = arith.constant 0 : i32
    %c0_i32_1 = arith.constant 0 : i32
    return %c0_i32, %c0_i32_0 : i32, i32
  }
  func.func @transform_3(%arg0: i32) -> (i32, i32) {
    %c0_i32 = arith.constant 0 : i32
    %c0_i32_0 = arith.constant 0 : i32
    %c0_i32_1 = arith.constant 0 : i32
    return %c0_i32, %c0_i32_0 : i32, i32
  }
  func.func @transform_4(%arg0: i32) -> (i32, i32) {
    %c0_i32 = arith.constant 0 : i32
    %c0_i32_0 = arith.constant 0 : i32
    %c0_i32_1 = arith.constant 0 : i32
    return %c0_i32, %c0_i32_0 : i32, i32
  }
  func.func @transform_5(%arg0: i32) -> (i32, i32) {
    %c0_i32 = arith.constant 0 : i32
    %c0_i32_0 = arith.constant 0 : i32
    return %arg0, %c0_i32 : i32, i32
  }
}

</mosaic_0001>

<bundles_post_ra>
// kernel: tpu_custom_call.1
= control target key start
LH: loop header
LB: loop body
LE: loop exit
PB: predicated region body
PF: predicated region fallthrough
CT: control target
= control target key end

     0   :  { %10 = vsyncpa [#allocation3], 0  ;;  %s371_s0 = inlined_call_operand.hbm [shape: f32[16,32], index: 0, kind: input, shape index: {}]   ;;  %s372_s1 = inlined_call_operand.hbm [shape: f32[32,128], index: 1, kind: input, shape index: {}]   ;;  %s373_s2 = inlined_call_operand.vmem [shape: f32[1,128], index: 2, kind: input, shape index: {}]   ;;  %s374_s3 = inlined_call_operand.hbm [shape: f32[128,128], index: 3, kind: input, shape index: {}]   ;;  %s375_s4 = inlined_call_operand.vmem [shape: f32[1,128], index: 4, kind: input, shape index: {}]   ;;  %s376_s5 = inlined_call_operand.hbm [shape: f32[16,128], index: 5, kind: output, shape index: {}]  }
   0x1   :  { %11 = vsyncpa [#allocation6], 0 }
   0x2   :  { %12 = vsyncpa [#allocation4], 0  ;;  %s30_s20 = sshll.u32 %s372_s1, 4  ;;  %s303_s21 = smov [#allocation5]   ;;  %s31_s20 = int_to_ptr.hbm [resolvable:$true] %s30_s20 }
   0x3   :  { %s32_s22 = sshll.u32 %s303_s21, 4  ;;  %s17_s25 = sshll.u32 %s371_s0, 4  ;;  %s33_s22 = int_to_ptr.vmem [resolvable:$true] %s32_s22  ;;  %s18_s25 = int_to_ptr.hbm [resolvable:$true] %s17_s25 }
   0x4   :  { %s304_s26 = smov 128   ;;  %s305_s27 = smov 8  }
   0x5   :  { %38 = dma.hbm_to_vmem [thread:$0]  %s31_s20, 512, %s33_s22, [#allocation6], %s304_s26, %s304_s26, %s305_s27  }
   0x6   :  { %s306_s28 = smov [#allocation2]   ;;  %s45_s1 = sshll.u32 %s374_s3, 4  ;;  %s46_s1 = int_to_ptr.hbm [resolvable:$true] %s45_s1 }
   0x7   :  { %s19_s29 = sshll.u32 %s306_s28, 4  ;;  %s307_s0 = smov [#allocation7]   ;;  %s20_s29 = int_to_ptr.vmem [resolvable:$true] %s19_s29 }
   0x8   :  { %25 = dma.hbm_to_vmem [thread:$0]  %s18_s25, 256, %s20_s29, [#allocation3], %s304_s26, %s304_s26, %s305_s27  }
   0x9   :  { %s47_s7 = sshll.u32 %s307_s0, 4  ;;  %s48_s7 = int_to_ptr.vmem [resolvable:$true] %s47_s7 }
   0xa   :  { %53 = dma.hbm_to_vmem [thread:$0]  %s46_s1, 2048, %s48_s7, [#allocation6], %s304_s26, %s304_s26, %s305_s27  }
   0xb   :  { %297 = dma.done.wait [#allocation3], 256  }
   0xc   :  { %298 = vsyncadd [#allocation3], 4294967040 }
   0xd   :  { %299 = dma.done.wait [#allocation6], 2560  }
   0xe   :  { %300 = vsyncadd [#allocation6], 4294964736  ;;  %v73_v0 = vld [vmem:[#allocation5 + $0x18] sm:$0xff]  ;;  %v72_v1 = vld [vmem:[#allocation5 + $0x10] sm:$0xff]  ;;  %vm78_vm0 = vcmask 261120   ;;  %s308_s11 = smov [#allocation8]  }
   0xf   :  { %97 = vmatpush.msra.mxu0 %v73_v0  ;;  %v71_v2 = vld [vmem:[#allocation5 + $0x8] sm:$0xff]  ;;  %v125_v3 = vld [vmem:[#allocation7 + $0x78] sm:$0xff]  ;;  %v124_v4 = vld [vmem:[#allocation7 + $0x70] sm:$0xff]  ;;  %s159_s12 = sshll.u32 %s308_s11, 4  ;;  %s160_s12 = int_to_ptr.vmem [resolvable:$true] %s159_s12 }
  0x10   :  { %130 = vmatpush.msra.mxu1 %v125_v3  ;;  %v70_v5 = vld [vmem:[#allocation5] sm:$0xff]  ;;  %v123_v6 = vld [vmem:[#allocation7 + $0x68] sm:$0xff]  ;;  %177 = vmatpush.msra.mxu2 %v125_v3  ;;  %v68_v7 = vld [vmem:[#allocation2] sm:$0xff] }
  0x11   :  { %98 = vmatpush.msra.mxu0 %v72_v1  ;;  %v122_v8 = vld [vmem:[#allocation7 + $0x60] sm:$0xff]  ;;  %v121_v9 = vld [vmem:[#allocation7 + $0x58] sm:$0xff]  ;;  %v120_v10 = vld [vmem:[#allocation7 + $0x50] sm:$0xff] }
  0x12   :  { %131 = vmatpush.msra.mxu1 %v124_v4  ;;  %178 = vmatpush.msra.mxu2 %v124_v4  ;;  %v119_v11 = vld [vmem:[#allocation7 + $0x48] sm:$0xff]  ;;  %v69_v12 = vld [vmem:[#allocation2 + $0x8] sm:$0xff]  ;;  %v118_v13 = vld [vmem:[#allocation7 + $0x40] sm:$0xff] }
  0x13   :  { %99 = vmatpush.msra.mxu0 %v71_v2  ;;  %v117_v14 = vld [vmem:[#allocation7 + $0x38] sm:$0xff]  ;;  %v116_v15 = vld [vmem:[#allocation7 + $0x30] sm:$0xff]  ;;  %v115_v16 = vld [vmem:[#allocation7 + $0x28] sm:$0xff] }
  0x14   :  { %132 = vmatpush.msra.mxu1 %v123_v6  ;;  %179 = vmatpush.msra.mxu2 %v123_v6  ;;  %v114_v17 = vld [vmem:[#allocation7 + $0x20] sm:$0xff]  ;;  %v113_v18 = vld [vmem:[#allocation7 + $0x18] sm:$0xff]  ;;  %v112_v19 = vld [vmem:[#allocation7 + $0x10] sm:$0xff] }
  0x15   :  { %100 = vmatpush.msra.mxu0 %v70_v5  ;;  %v111_v20 = vld [vmem:[#allocation7 + $0x8] sm:$0xff]  ;;  %v110_v21 = vld [vmem:[#allocation7] sm:$0xff]  ;;  %v199_v22 = vld [vmem:[%s373_s2] ss:$0 sm:$0xff]  ;;  %s161_s2 = sshll.u32 %s376_s5, 4  ;;  %s162_s2 = int_to_ptr.hbm [resolvable:$true] %s161_s2 }
  0x16   :  { %175 = vmatmul.msk.f32.vlgmr.msra.gmra.mxu0 %vm78_vm0, %v68_v7  ;;  %133 = vmatpush.msra.mxu1 %v122_v8  ;;  %v200_v29 = vld [vmem:[%s375_s4] ss:$0 sm:$0xff] }
  0x17   :  { %180 = vmatpush.msra.mxu2 %v122_v8 }
  0x18   :  { %134 = vmatpush.msra.mxu1 %v121_v9 }
  0x19   :  { %181 = vmatpush.msra.mxu2 %v121_v9 }
  0x1a   :  { %135 = vmatpush.msra.mxu1 %v120_v10 }
  0x1b   :  { %182 = vmatpush.msra.mxu2 %v120_v10 }
  0x1c   :  { %136 = vmatpush.msra.mxu1 %v119_v11 }
  0x1d   :  { %183 = vmatpush.msra.mxu2 %v119_v11 }
  0x1e   :  { %176 = vmatmul.msk.f32.gmra.mxu0 %vm78_vm0, %v69_v12  ;;  %137 = vmatpush.msra.mxu1 %v118_v13 }
  0x1f   :  { %184 = vmatpush.msra.mxu2 %v118_v13 }
  0x20   :  { %138 = vmatpush.msra.mxu1 %v117_v14 }
  0x21   :  { %185 = vmatpush.msra.mxu2 %v117_v14 }
  0x22   :  { %139 = vmatpush.msra.mxu1 %v116_v15 }
  0x23   :  { %186 = vmatpush.msra.mxu2 %v116_v15 }
  0x24   :  { %140 = vmatpush.msra.mxu1 %v115_v16 }
  0x25   :  { %187 = vmatpush.msra.mxu2 %v115_v16 }
  0x26   :  { %141 = vmatpush.msra.mxu1 %v114_v17 }
  0x27   :  { %188 = vmatpush.msra.mxu2 %v114_v17 }
  0x28   :  { %142 = vmatpush.msra.mxu1 %v113_v18 }
  0x29   :  { %189 = vmatpush.msra.mxu2 %v113_v18 }
  0x2a   :  { %143 = vmatpush.msra.mxu1 %v112_v19 }
  0x2b   :  { %190 = vmatpush.msra.mxu2 %v112_v19 }
  0x2c   :  { %144 = vmatpush.msra.mxu1 %v111_v20 }
  0x2d   :  { %191 = vmatpush.msra.mxu2 %v111_v20 }
  0x2e   :  { %145 = vmatpush.msra.mxu1 %v110_v21 }
  0x2f   :  { %192 = vmatpush.msra.mxu2 %v110_v21 }
  0x93   :  { %v102_v23 = vpop.f32.mrf.mxu0 }
  0x94   :  { %v103_v24 = vadd.f32 %v199_v22, %v102_v23 }
  0x96   :  { %v108_v25 = vmax.f32 %v103_v24, 0.0 }
  0x98   :  { %146 = vmatmul.f32.vlgmr.msra.gmra.mxu1 %v108_v25 }
  0x9b   :  { %v105_v26 = vpop.f32.mrf.mxu0 }
  0x9c   :  { %v106_v27 = vadd.f32 %v199_v22, %v105_v26 }
  0x9e   :  { %v109_v28 = vmax.f32 %v106_v27, 0.0 }
  0xa0   :  { %149 = vmatmul.f32.vlgmr.msra.gmra.mxu2 %v109_v28 }
 0x115   :  { %v147_v30 = vpop.f32.mrf.mxu1 }
 0x116   :  { %v148_v31 = vadd.f32 %v200_v29, %v147_v30 }
 0x118   :  { %153 = vst [vmem:[#allocation8] sm:$0xff] %v148_v31 }
 0x123   :  { %v150_v32 = vpop.f32.mrf.mxu2 }
 0x124   :  { %v151_v33 = vadd.f32 %v200_v29, %v150_v32 }
 0x126   :  { %154 = vst [vmem:[#allocation8 + $0x8] sm:$0xff] %v151_v33 }
 0x127   :  { %167 = dma.vmem_to_hbm [thread:$0]  %s160_s12, 256, %s162_s2, [#allocation4], %s304_s26, %s304_s26, %s305_s27  }
 0x128   :  { %301 = dma.done.wait [#allocation4], 256  }
 0x129   :  { %302 = vsyncadd [#allocation4], 4294967040 }
 0x12a   :  { %172 = vsyncpa [#allocation3], 1 }
 0x12b   :  { %173 = vsyncpa [#allocation6], 1 }
 0x12c   :  { %174 = vsyncpa [#allocation4], 1 }

</bundles_post_ra>
